<compile_context>
chip_gen: v7x
topology: tpu7x:2x2x1
jax: 0.10.0
libtpu: 0.0.40
codegen_flags: <defaults>
</compile_context>

<pallas_src>
import functools

import jax
import jax.numpy as jnp
from jax.experimental import pallas as pl
from jax.experimental.pallas import tpu as pltpu


def _round_up(x, m):
    return ((x + m - 1) // m) * m


# ----------------------------------------------------------------------------
# Fused kernel: the entire encode -> decode chain for one batch tile.
# ----------------------------------------------------------------------------
def _fused_forward_kernel(x_ref, w_ref, b_ref, out_ref, *,
                          meta, n_enc, n_dec, n_agents,
                          latent_dim, h_dim, d_out, slab_cols):
    """
    x_ref   : (n_agents, tb, d_in) f32  -- agent-blocked input rows
    w_ref   : (sum_rows, wcols)   bf16  -- all Linear weights, row-concatenated
    b_ref   : (n_lin, wcols)      f32   -- all Linear biases, one row per layer
    out_ref : (tb, slab_cols)     f32   -- lane-dense packed output slab:
              [0,d_out) recons | per-agent z (latent) | per-agent h (h_dim) | 0-pad
    meta    : static tuple of (row_off, d_in, d_out) per Linear, layer order:
              enc[0..n_enc), encoder_rnn, fc_repr, decoder_input,
              dec[0..n_dec), final_layer
    """
    tb = out_ref.shape[0]

    # Hoist all weight / bias loads (weights are VMEM-resident).
    Ws, Bs = [], []
    for idx, (off, din, dout) in enumerate(meta):
        Ws.append(w_ref[off:off + din, 0:dout])        # bf16 (din, dout)
        Bs.append(b_ref[idx:idx + 1, 0:dout])          # f32  (1, dout)

    def linear(a, idx, act):
        y = jnp.dot(a.astype(jnp.bfloat16), Ws[idx],
                    preferred_element_type=jnp.float32) + Bs[idx]
        if act == "leaky":
            y = jnp.maximum(y, jnp.float32(0.01) * y)   # nn.LeakyReLU default
        elif act == "relu":
            y = jnp.maximum(y, jnp.float32(0.0))
        return y

    idx_rnn = n_enc
    idx_repr = n_enc + 1
    idx_dec_in = n_enc + 2
    idx_dec0 = n_enc + 3
    idx_final = n_enc + 3 + n_dec

    z_base = d_out
    h_base = d_out + n_agents * latent_dim
    used = h_base + n_agents * h_dim

    di_off, _, di_dout = meta[idx_dec_in]

    # ---- encode per agent; fold decoder_input across agents ----
    r = None
    for a in range(n_agents):
        act = x_ref[a].astype(jnp.float32)              # (tb, d_in)
        for li in range(n_enc):
            act = linear(act, li, "leaky")
        h_a = linear(act, idx_rnn, "relu")              # (tb, h_dim)
        z_a = linear(h_a, idx_repr, "none")             # (tb, latent)

        out_ref[:, z_base + a * latent_dim: z_base + (a + 1) * latent_dim] = z_a
        out_ref[:, h_base + a * h_dim: h_base + (a + 1) * h_dim] = h_a

        # decoder_input: rows [a*L, (a+1)*L) of its weight
        w_a = w_ref[di_off + a * latent_dim: di_off + (a + 1) * latent_dim, 0:di_dout]
        part = jnp.dot(z_a.astype(jnp.bfloat16), w_a,
                       preferred_element_type=jnp.float32)
        if a == 0:
            r = part + Bs[idx_dec_in]                   # bias folded into agent 0
        else:
            r = r + part

    # ---- decode ----
    for li in range(n_dec):
        r = linear(r, idx_dec0 + li, "leaky")
    recons = linear(r, idx_final, "none")               # (tb, d_out)

    out_ref[:, 0:d_out] = recons
    if used < slab_cols:                                # zero the lane padding
        out_ref[:, used:slab_cols] = jnp.zeros((tb, slab_cols - used), jnp.float32)


# ----------------------------------------------------------------------------
# Parameter construction (deterministic, PyTorch-Linear-style uniform init)
# ----------------------------------------------------------------------------
def _init_linear(key, d_in, d_out, dtype=jnp.float32):
    kw, kb = jax.random.split(key)
    bound = 1.0 / jnp.sqrt(jnp.float32(d_in))
    # stored as (D_in, D_out) so the kernel computes x @ W directly
    w = jax.random.uniform(kw, (d_in, d_out), dtype, -bound, bound)
    b = jax.random.uniform(kb, (1, d_out), dtype, -bound, bound)
    return w, b


def make_params(key, input_shape, output_shape, n_agents, latent_dim,
                enc_hidden_dims, dec_hidden_dims, encoder_hidden_dim):
    keys = jax.random.split(key, 16)
    ki = iter(range(16))
    params = {}

    enc = []
    last = input_shape
    for h in enc_hidden_dims:
        enc.append(_init_linear(keys[next(ki)], last, h))
        last = h
    params["encoder"] = enc

    params["encoder_rnn"] = _init_linear(keys[next(ki)], enc_hidden_dims[-1],
                                         encoder_hidden_dim)
    params["fc_repr"] = _init_linear(keys[next(ki)], encoder_hidden_dim, latent_dim)
    params["decoder_input"] = _init_linear(keys[next(ki)],
                                           latent_dim * n_agents,
                                           dec_hidden_dims[0])

    dec = []
    last = dec_hidden_dims[0]
    for h in dec_hidden_dims[1:]:
        dec.append(_init_linear(keys[next(ki)], last, h))
        last = h
    params["decoder"] = dec

    params["final_layer"] = _init_linear(keys[next(ki)], dec_hidden_dims[-1],
                                         output_shape)
    return params


# ----------------------------------------------------------------------------
# Weight / bias slab packing (2 resident VMEM refs instead of 18)
# ----------------------------------------------------------------------------
def _build_slabs(params):
    layers = (list(params["encoder"])
              + [params["encoder_rnn"], params["fc_repr"], params["decoder_input"]]
              + list(params["decoder"])
              + [params["final_layer"]])
    wcols = max(int(w.shape[1]) for (w, _b) in layers)
    meta = []
    w_blocks, b_rows = [], []
    row_off = 0
    for (w, b) in layers:
        din, dout = int(w.shape[0]), int(w.shape[1])
        rows_pad = _round_up(din, 16)                   # bf16 sublane alignment
        wp = jnp.zeros((rows_pad, wcols), jnp.bfloat16)
        wp = wp.at[:din, :dout].set(w.astype(jnp.bfloat16))
        w_blocks.append(wp)
        bp = jnp.zeros((1, wcols), jnp.float32)
        bp = bp.at[:, :dout].set(b.reshape(1, dout).astype(jnp.float32))
        b_rows.append(bp)
        meta.append((row_off, din, dout))
        row_off += rows_pad
    w_slab = jnp.concatenate(w_blocks, axis=0)          # (sum_rows, wcols) bf16
    b_slab = jnp.concatenate(b_rows, axis=0)            # (n_lin,   wcols) f32
    return w_slab, b_slab, tuple(meta), layers


def _pick_tb(batch, max_tb=1024):
    """Batch tile: largest sublane-friendly divisor <= max_tb; >=2 grid steps
    for large batches so the v7x megacore can shard the 'parallel' axis."""
    if batch <= max_tb:
        if batch >= 512 and (batch // 2) % 8 == 0:
            return batch // 2
        return batch
    best = None
    for d in range(8, max_tb + 1, 8):
        if batch % d == 0:
            best = d
    return best if best is not None else batch          # fallback: one big tile


# ----------------------------------------------------------------------------
# Forward pass (mirrors ObIndAEEnc.forward) — single fused pallas_call
# ----------------------------------------------------------------------------
def ob_ind_ae_forward(params, inp, encoder_hidden_state, *,
                      n_agents, latent_dim, encoder_hidden_dim):
    n_rows, d_in = inp.shape
    assert n_rows % n_agents == 0
    batch = n_rows // n_agents

    # encoder_use_rnn == False -> h_in unused; reshape kept as a shape check.
    _ = encoder_hidden_state.reshape(-1, encoder_hidden_dim)
    # TODO(synk): GRUCell branch (encoder_use_rnn=True) not implemented.

    w_slab, b_slab, meta, layers = _build_slabs(params)
    n_enc = len(params["encoder"])
    n_dec = len(params["decoder"])
    h_dim = int(params["encoder_rnn"][0].shape[1])
    d_out = int(params["final_layer"][0].shape[1])

    used = d_out + n_agents * (latent_dim + h_dim)
    slab_cols = max(128, _round_up(used, 128))          # lane-dense output slab

    tb = _pick_tb(batch)
    assert batch % tb == 0
    grid = (batch // tb,)

    # agent-blocked input: x_ab[a, b, :] == inp[b * n_agents + a, :]
    x_ab = inp.astype(jnp.float32).reshape(batch, n_agents, d_in).transpose(1, 0, 2)

    kernel = functools.partial(
        _fused_forward_kernel, meta=meta, n_enc=n_enc, n_dec=n_dec,
        n_agents=n_agents, latent_dim=latent_dim, h_dim=h_dim,
        d_out=d_out, slab_cols=slab_cols)

    # Advisory cost estimate for XLA scheduling around the custom call.
    flops = 0
    for idx, (w, _b) in enumerate(layers):
        rows = n_rows if idx < n_enc + 2 else batch
        flops += 2 * rows * int(w.shape[0]) * int(w.shape[1])
    bytes_accessed = int(x_ab.size) * 4 + int(w_slab.size) * 2 \
        + int(b_slab.size) * 4 + batch * slab_cols * 4

    slab = pl.pallas_call(
        kernel,
        out_shape=jax.ShapeDtypeStruct((batch, slab_cols), jnp.float32),
        grid=grid,
        in_specs=[
            pl.BlockSpec((n_agents, tb, d_in), lambda i: (0, i, 0)),
            pl.BlockSpec(w_slab.shape, lambda i: (0, 0)),   # resident weights
            pl.BlockSpec(b_slab.shape, lambda i: (0, 0)),   # resident biases
        ],
        out_specs=pl.BlockSpec((tb, slab_cols), lambda i: (i, 0)),
        compiler_params=pltpu.CompilerParams(
            dimension_semantics=("parallel",),
            vmem_limit_bytes=32 * 1024 * 1024),
        cost_estimate=pl.CostEstimate(
            flops=flops, transcendentals=0, bytes_accessed=bytes_accessed),
    )(x_ab, w_slab, b_slab)

    recons = slab[:, :d_out].astype(inp.dtype)
    z = slab[:, d_out:d_out + n_agents * latent_dim].reshape(
        batch, n_agents, latent_dim).astype(inp.dtype)
    h = slab[:, d_out + n_agents * latent_dim: used].reshape(
        batch, n_agents, h_dim).reshape(n_rows, h_dim).astype(inp.dtype)
    return recons, inp, z, h


# ----------------------------------------------------------------------------
# Pure-JAX reference (mirrors the kernel's bf16-operand / f32-accum math)
# ----------------------------------------------------------------------------
def _reference_forward(params, inp, n_agents, latent_dim):
    def lin(x, wb):
        w, b = wb
        return jnp.dot(x.astype(jnp.bfloat16), w.astype(jnp.bfloat16),
                       preferred_element_type=jnp.float32) + b.reshape(1, -1)

    x = inp.astype(jnp.float32)
    for wb in params["encoder"]:
        y = lin(x, wb)
        x = jnp.where(y > 0, y, 0.01 * y)
    h = jnp.maximum(lin(x, params["encoder_rnn"]), 0.0)
    z_flat = lin(h, params["fc_repr"])
    z = z_flat.reshape(-1, n_agents, latent_dim)
    zd = z.reshape(z.shape[0], n_agents * latent_dim)
    r = lin(zd, params["decoder_input"])
    for wb in params["decoder"]:
        y = lin(r, wb)
        r = jnp.where(y > 0, y, 0.01 * y)
    recons = lin(r, params["final_layer"])
    return recons, z, h


# ----------------------------------------------------------------------------
# Main
# ----------------------------------------------------------------------------
if __name__ == "__main__":
    INPUT_SHAPE = 16          # D_IN
    OUTPUT_SHAPE = 16         # D_OUT
    N_AGENTS = 2
    LATENT_DIM = 8
    ENC_HIDDEN_DIMS = [32, 32]
    DEC_HIDDEN_DIMS = [32, 32]
    ENCODER_HIDDEN_DIM = 32
    BATCH = 2
    N = BATCH * N_AGENTS      # rows seen by the encoder ([N x D_IN])

    root = jax.random.PRNGKey(0)
    k_params, k_x, k_h = jax.random.split(root, 3)

    params = make_params(k_params, INPUT_SHAPE, OUTPUT_SHAPE, N_AGENTS,
                         LATENT_DIM, ENC_HIDDEN_DIMS, DEC_HIDDEN_DIMS,
                         ENCODER_HIDDEN_DIM)

    x = jax.random.normal(k_x, (N, INPUT_SHAPE), jnp.float32)
    encoder_hidden_state = jax.random.normal(
        k_h, (BATCH, N_AGENTS, ENCODER_HIDDEN_DIM), jnp.float32)

    recons, inp_out, z, h = ob_ind_ae_forward(
        params, x, encoder_hidden_state,
        n_agents=N_AGENTS, latent_dim=LATENT_DIM,
        encoder_hidden_dim=ENCODER_HIDDEN_DIM)
    jax.block_until_ready((recons, inp_out, z, h))

    assert recons.shape == (BATCH, OUTPUT_SHAPE)
    assert inp_out.shape == (N, INPUT_SHAPE)
    assert z.shape == (BATCH, N_AGENTS, LATENT_DIM)
    assert h.shape == (N, ENCODER_HIDDEN_DIM)

    # Correctness smoke test against a pure-JAX reference (same bf16 math).
    ref_recons, ref_z, ref_h = _reference_forward(params, x, N_AGENTS, LATENT_DIM)
    assert jnp.allclose(recons, ref_recons, rtol=2e-2, atol=2e-2)
    assert jnp.allclose(z, ref_z, rtol=2e-2, atol=2e-2)
    assert jnp.allclose(h, ref_h, rtol=2e-2, atol=2e-2)

    print("KERNEL_OK")
</pallas_src>

<mosaic_0001>
module attributes {stable_mosaic.version = 11 : i64} {
  func.func @_fused_forward_kernel(%arg0: i32, %arg1: memref<2x2x16xf32, #tpu.memory_space<vmem>>, %arg2: memref<192x32xbf16, #tpu.memory_space<vmem>>, %arg3: memref<7x32xf32, #tpu.memory_space<vmem>>, %arg4: memref<2x128xf32, #tpu.memory_space<vmem>>) attributes {dimension_semantics = [#tpu.dimension_semantics<parallel>], iteration_bounds = array<i64: 1>, scalar_prefetch = 0 : i64, scratch_operands = 0 : i64, tpu.core_type = #tpu.core_type<tc>, window_params = [{transform_indices = @transform_0, window_bounds = array<i64: 2, 2, 16>}, {pipeline_mode = #tpu.pipeline_mode<synchronous>, transform_indices = @transform_1, window_bounds = array<i64: 192, 32>}, {pipeline_mode = #tpu.pipeline_mode<synchronous>, transform_indices = @transform_2, window_bounds = array<i64: 7, 32>}, {transform_indices = @transform_3, window_bounds = array<i64: 2, 128>}]} {
    %c0 = arith.constant 0 : index
    %c0_0 = arith.constant 0 : index
    %0 = vector.load %arg2[%c0, %c0_0] : memref<192x32xbf16, #tpu.memory_space<vmem>>, vector<16x32xbf16>
    %c0_1 = arith.constant 0 : index
    %c0_2 = arith.constant 0 : index
    %1 = vector.load %arg3[%c0_1, %c0_2] : memref<7x32xf32, #tpu.memory_space<vmem>>, vector<1x32xf32>
    %c16 = arith.constant 16 : index
    %c0_3 = arith.constant 0 : index
    %2 = vector.load %arg2[%c16, %c0_3] : memref<192x32xbf16, #tpu.memory_space<vmem>>, vector<32x32xbf16>
    %c1 = arith.constant 1 : index
    %c0_4 = arith.constant 0 : index
    %3 = vector.load %arg3[%c1, %c0_4] : memref<7x32xf32, #tpu.memory_space<vmem>>, vector<1x32xf32>
    %c48 = arith.constant 48 : index
    %c0_5 = arith.constant 0 : index
    %4 = vector.load %arg2[%c48, %c0_5] : memref<192x32xbf16, #tpu.memory_space<vmem>>, vector<32x32xbf16>
    %c2 = arith.constant 2 : index
    %c0_6 = arith.constant 0 : index
    %5 = vector.load %arg3[%c2, %c0_6] : memref<7x32xf32, #tpu.memory_space<vmem>>, vector<1x32xf32>
    %c80 = arith.constant 80 : index
    %c0_7 = arith.constant 0 : index
    %6 = vector.load %arg2[%c80, %c0_7] : memref<192x32xbf16, #tpu.memory_space<vmem>>, vector<32x8xbf16>
    %c3 = arith.constant 3 : index
    %c0_8 = arith.constant 0 : index
    %7 = vector.load %arg3[%c3, %c0_8] : memref<7x32xf32, #tpu.memory_space<vmem>>, vector<1x8xf32>
    %c4 = arith.constant 4 : index
    %c0_9 = arith.constant 0 : index
    %8 = vector.load %arg3[%c4, %c0_9] : memref<7x32xf32, #tpu.memory_space<vmem>>, vector<1x32xf32>
    %c128 = arith.constant 128 : index
    %c0_10 = arith.constant 0 : index
    %9 = vector.load %arg2[%c128, %c0_10] : memref<192x32xbf16, #tpu.memory_space<vmem>>, vector<32x32xbf16>
    %c5 = arith.constant 5 : index
    %c0_11 = arith.constant 0 : index
    %10 = vector.load %arg3[%c5, %c0_11] : memref<7x32xf32, #tpu.memory_space<vmem>>, vector<1x32xf32>
    %c160 = arith.constant 160 : index
    %c0_12 = arith.constant 0 : index
    %11 = vector.load %arg2[%c160, %c0_12] : memref<192x32xbf16, #tpu.memory_space<vmem>>, vector<32x16xbf16>
    %c6 = arith.constant 6 : index
    %c0_13 = arith.constant 0 : index
    %12 = vector.load %arg3[%c6, %c0_13] : memref<7x32xf32, #tpu.memory_space<vmem>>, vector<1x16xf32>
    %c0_14 = arith.constant 0 : index
    %c0_15 = arith.constant 0 : index
    %c0_16 = arith.constant 0 : index
    %13 = vector.load %arg1[%c0_14, %c0_15, %c0_16] : memref<2x2x16xf32, #tpu.memory_space<vmem>>, vector<1x2x16xf32>
    %14 = vector.shape_cast %13 : vector<1x2x16xf32> to vector<2x16xf32>
    %15 = arith.truncf %14 : vector<2x16xf32> to vector<2x16xbf16>
    %cst = arith.constant dense<0.000000e+00> : vector<2x32xf32>
    %16 = tpu.matmul %15, %0, %cst {dimension_numbers = #tpu.dot_dimension_numbers<[1], [0], [0], [1], [0, 0, 1, 1], [], []>} : vector<2x16xbf16>, vector<16x32xbf16>, vector<2x32xf32> -> vector<2x32xf32>
    %17 = vector.broadcast %1 : vector<1x32xf32> to vector<2x32xf32>
    %18 = arith.addf %16, %17 : vector<2x32xf32>
    %cst_17 = arith.constant 0.00999999977 : f32
    %19 = vector.broadcast %cst_17 : f32 to vector<2x32xf32>
    %20 = arith.mulf %19, %18 : vector<2x32xf32>
    %21 = arith.maximumf %18, %20 : vector<2x32xf32>
    %22 = arith.truncf %21 : vector<2x32xf32> to vector<2x32xbf16>
    %cst_18 = arith.constant dense<0.000000e+00> : vector<2x32xf32>
    %23 = tpu.matmul %22, %2, %cst_18 {dimension_numbers = #tpu.dot_dimension_numbers<[1], [0], [0], [1], [0, 0, 1, 1], [], []>} : vector<2x32xbf16>, vector<32x32xbf16>, vector<2x32xf32> -> vector<2x32xf32>
    %24 = vector.broadcast %3 : vector<1x32xf32> to vector<2x32xf32>
    %25 = arith.addf %23, %24 : vector<2x32xf32>
    %cst_19 = arith.constant 0.00999999977 : f32
    %26 = vector.broadcast %cst_19 : f32 to vector<2x32xf32>
    %27 = arith.mulf %26, %25 : vector<2x32xf32>
    %28 = arith.maximumf %25, %27 : vector<2x32xf32>
    %29 = arith.truncf %28 : vector<2x32xf32> to vector<2x32xbf16>
    %cst_20 = arith.constant dense<0.000000e+00> : vector<2x32xf32>
    %30 = tpu.matmul %29, %4, %cst_20 {dimension_numbers = #tpu.dot_dimension_numbers<[1], [0], [0], [1], [0, 0, 1, 1], [], []>} : vector<2x32xbf16>, vector<32x32xbf16>, vector<2x32xf32> -> vector<2x32xf32>
    %31 = vector.broadcast %5 : vector<1x32xf32> to vector<2x32xf32>
    %32 = arith.addf %30, %31 : vector<2x32xf32>
    %cst_21 = arith.constant 0.000000e+00 : f32
    %33 = vector.broadcast %cst_21 : f32 to vector<2x32xf32>
    %34 = arith.maximumf %32, %33 : vector<2x32xf32>
    %35 = arith.truncf %34 : vector<2x32xf32> to vector<2x32xbf16>
    %cst_22 = arith.constant dense<0.000000e+00> : vector<2x8xf32>
    %36 = tpu.matmul %35, %6, %cst_22 {dimension_numbers = #tpu.dot_dimension_numbers<[1], [0], [0], [1], [0, 0, 1, 1], [], []>} : vector<2x32xbf16>, vector<32x8xbf16>, vector<2x8xf32> -> vector<2x8xf32>
    %37 = vector.broadcast %7 : vector<1x8xf32> to vector<2x8xf32>
    %38 = arith.addf %36, %37 : vector<2x8xf32>
    %c0_23 = arith.constant 0 : index
    %c16_24 = arith.constant 16 : index
    %39 = vector.load %arg4[%c0_23, %c16_24] : memref<2x128xf32, #tpu.memory_space<vmem>>, vector<2x8xf32>
    tpu.vector_store %arg4[%c0_23, %c16_24], %38 {strides = array<i32>} : memref<2x128xf32, #tpu.memory_space<vmem>>, vector<2x8xf32>,
    %c0_25 = arith.constant 0 : index
    %c32 = arith.constant 32 : index
    %40 = vector.load %arg4[%c0_25, %c32] : memref<2x128xf32, #tpu.memory_space<vmem>>, vector<2x32xf32>
    tpu.vector_store %arg4[%c0_25, %c32], %34 {strides = array<i32>} : memref<2x128xf32, #tpu.memory_space<vmem>>, vector<2x32xf32>,
    %c112 = arith.constant 112 : index
    %c0_26 = arith.constant 0 : index
    %41 = vector.load %arg2[%c112, %c0_26] : memref<192x32xbf16, #tpu.memory_space<vmem>>, vector<8x32xbf16>
    %42 = arith.truncf %38 : vector<2x8xf32> to vector<2x8xbf16>
    %cst_27 = arith.constant dense<0.000000e+00> : vector<2x32xf32>
    %43 = tpu.matmul %42, %41, %cst_27 {dimension_numbers = #tpu.dot_dimension_numbers<[1], [0], [0], [1], [0, 0, 1, 1], [], []>} : vector<2x8xbf16>, vector<8x32xbf16>, vector<2x32xf32> -> vector<2x32xf32>
    %44 = vector.broadcast %8 : vector<1x32xf32> to vector<2x32xf32>
    %45 = arith.addf %43, %44 : vector<2x32xf32>
    %c1_28 = arith.constant 1 : index
    %c0_29 = arith.constant 0 : index
    %c0_30 = arith.constant 0 : index
    %46 = vector.load %arg1[%c1_28, %c0_29, %c0_30] : memref<2x2x16xf32, #tpu.memory_space<vmem>>, vector<1x2x16xf32>
    %47 = vector.shape_cast %46 : vector<1x2x16xf32> to vector<2x16xf32>
    %48 = arith.truncf %47 : vector<2x16xf32> to vector<2x16xbf16>
    %cst_31 = arith.constant dense<0.000000e+00> : vector<2x32xf32>
    %49 = tpu.matmul %48, %0, %cst_31 {dimension_numbers = #tpu.dot_dimension_numbers<[1], [0], [0], [1], [0, 0, 1, 1], [], []>} : vector<2x16xbf16>, vector<16x32xbf16>, vector<2x32xf32> -> vector<2x32xf32>
    %50 = vector.broadcast %1 : vector<1x32xf32> to vector<2x32xf32>
    %51 = arith.addf %49, %50 : vector<2x32xf32>
    %cst_32 = arith.constant 0.00999999977 : f32
    %52 = vector.broadcast %cst_32 : f32 to vector<2x32xf32>
    %53 = arith.mulf %52, %51 : vector<2x32xf32>
    %54 = arith.maximumf %51, %53 : vector<2x32xf32>
    %55 = arith.truncf %54 : vector<2x32xf32> to vector<2x32xbf16>
    %cst_33 = arith.constant dense<0.000000e+00> : vector<2x32xf32>
    %56 = tpu.matmul %55, %2, %cst_33 {dimension_numbers = #tpu.dot_dimension_numbers<[1], [0], [0], [1], [0, 0, 1, 1], [], []>} : vector<2x32xbf16>, vector<32x32xbf16>, vector<2x32xf32> -> vector<2x32xf32>
    %57 = vector.broadcast %3 : vector<1x32xf32> to vector<2x32xf32>
    %58 = arith.addf %56, %57 : vector<2x32xf32>
    %cst_34 = arith.constant 0.00999999977 : f32
    %59 = vector.broadcast %cst_34 : f32 to vector<2x32xf32>
    %60 = arith.mulf %59, %58 : vector<2x32xf32>
    %61 = arith.maximumf %58, %60 : vector<2x32xf32>
    %62 = arith.truncf %61 : vector<2x32xf32> to vector<2x32xbf16>
    %cst_35 = arith.constant dense<0.000000e+00> : vector<2x32xf32>
    %63 = tpu.matmul %62, %4, %cst_35 {dimension_numbers = #tpu.dot_dimension_numbers<[1], [0], [0], [1], [0, 0, 1, 1], [], []>} : vector<2x32xbf16>, vector<32x32xbf16>, vector<2x32xf32> -> vector<2x32xf32>
    %64 = vector.broadcast %5 : vector<1x32xf32> to vector<2x32xf32>
    %65 = arith.addf %63, %64 : vector<2x32xf32>
    %cst_36 = arith.constant 0.000000e+00 : f32
    %66 = vector.broadcast %cst_36 : f32 to vector<2x32xf32>
    %67 = arith.maximumf %65, %66 : vector<2x32xf32>
    %68 = arith.truncf %67 : vector<2x32xf32> to vector<2x32xbf16>
    %cst_37 = arith.constant dense<0.000000e+00> : vector<2x8xf32>
    %69 = tpu.matmul %68, %6, %cst_37 {dimension_numbers = #tpu.dot_dimension_numbers<[1], [0], [0], [1], [0, 0, 1, 1], [], []>} : vector<2x32xbf16>, vector<32x8xbf16>, vector<2x8xf32> -> vector<2x8xf32>
    %70 = vector.broadcast %7 : vector<1x8xf32> to vector<2x8xf32>
    %71 = arith.addf %69, %70 : vector<2x8xf32>
    %c0_38 = arith.constant 0 : index
    %c24 = arith.constant 24 : index
    %72 = vector.load %arg4[%c0_38, %c24] : memref<2x128xf32, #tpu.memory_space<vmem>>, vector<2x8xf32>
    tpu.vector_store %arg4[%c0_38, %c24], %71 {strides = array<i32>} : memref<2x128xf32, #tpu.memory_space<vmem>>, vector<2x8xf32>,
    %c0_39 = arith.constant 0 : index
    %c64 = arith.constant 64 : index
    %73 = vector.load %arg4[%c0_39, %c64] : memref<2x128xf32, #tpu.memory_space<vmem>>, vector<2x32xf32>
    tpu.vector_store %arg4[%c0_39, %c64], %67 {strides = array<i32>} : memref<2x128xf32, #tpu.memory_space<vmem>>, vector<2x32xf32>,
    %c120 = arith.constant 120 : index
    %c0_40 = arith.constant 0 : index
    %74 = vector.load %arg2[%c120, %c0_40] : memref<192x32xbf16, #tpu.memory_space<vmem>>, vector<8x32xbf16>
    %75 = arith.truncf %71 : vector<2x8xf32> to vector<2x8xbf16>
    %cst_41 = arith.constant dense<0.000000e+00> : vector<2x32xf32>
    %76 = tpu.matmul %75, %74, %cst_41 {dimension_numbers = #tpu.dot_dimension_numbers<[1], [0], [0], [1], [0, 0, 1, 1], [], []>} : vector<2x8xbf16>, vector<8x32xbf16>, vector<2x32xf32> -> vector<2x32xf32>
    %77 = arith.addf %45, %76 : vector<2x32xf32>
    %78 = arith.truncf %77 : vector<2x32xf32> to vector<2x32xbf16>
    %cst_42 = arith.constant dense<0.000000e+00> : vector<2x32xf32>
    %79 = tpu.matmul %78, %9, %cst_42 {dimension_numbers = #tpu.dot_dimension_numbers<[1], [0], [0], [1], [0, 0, 1, 1], [], []>} : vector<2x32xbf16>, vector<32x32xbf16>, vector<2x32xf32> -> vector<2x32xf32>
    %80 = vector.broadcast %10 : vector<1x32xf32> to vector<2x32xf32>
    %81 = arith.addf %79, %80 : vector<2x32xf32>
    %cst_43 = arith.constant 0.00999999977 : f32
    %82 = vector.broadcast %cst_43 : f32 to vector<2x32xf32>
    %83 = arith.mulf %82, %81 : vector<2x32xf32>
    %84 = arith.maximumf %81, %83 : vector<2x32xf32>
    %85 = arith.truncf %84 : vector<2x32xf32> to vector<2x32xbf16>
    %cst_44 = arith.constant dense<0.000000e+00> : vector<2x16xf32>
    %86 = tpu.matmul %85, %11, %cst_44 {dimension_numbers = #tpu.dot_dimension_numbers<[1], [0], [0], [1], [0, 0, 1, 1], [], []>} : vector<2x32xbf16>, vector<32x16xbf16>, vector<2x16xf32> -> vector<2x16xf32>
    %87 = vector.broadcast %12 : vector<1x16xf32> to vector<2x16xf32>
    %88 = arith.addf %86, %87 : vector<2x16xf32>
    %c0_45 = arith.constant 0 : index
    %c0_46 = arith.constant 0 : index
    %89 = vector.load %arg4[%c0_45, %c0_46] : memref<2x128xf32, #tpu.memory_space<vmem>>, vector<2x16xf32>
    tpu.vector_store %arg4[%c0_45, %c0_46], %88 {strides = array<i32>} : memref<2x128xf32, #tpu.memory_space<vmem>>, vector<2x16xf32>,
    %cst_47 = arith.constant 0.000000e+00 : f32
    %90 = vector.broadcast %cst_47 : f32 to vector<2x32xf32>
    %c0_48 = arith.constant 0 : index
    %c96 = arith.constant 96 : index
    %91 = vector.load %arg4[%c0_48, %c96] : memref<2x128xf32, #tpu.memory_space<vmem>>, vector<2x32xf32>
    tpu.vector_store %arg4[%c0_48, %c96], %90 {strides = array<i32>} : memref<2x128xf32, #tpu.memory_space<vmem>>, vector<2x32xf32>,
    return
  }
  func.func @transform_0(%arg0: i32) -> (i32, i32, i32) {
    %c0_i32 = arith.constant 0 : i32
    %c0_i32_0 = arith.constant 0 : i32
    %c0_i32_1 = arith.constant 0 : i32
    return %c0_i32, %arg0, %c0_i32_0 : i32, i32, i32
  }
  func.func @transform_1(%arg0: i32) -> (i32, i32) {
    %c0_i32 = arith.constant 0 : i32
    %c0_i32_0 = arith.constant 0 : i32
    %c0_i32_1 = arith.constant 0 : i32
    return %c0_i32, %c0_i32_0 : i32, i32
  }
  func.func @transform_2(%arg0: i32) -> (i32, i32) {
    %c0_i32 = arith.constant 0 : i32
    %c0_i32_0 = arith.constant 0 : i32
    %c0_i32_1 = arith.constant 0 : i32
    return %c0_i32, %c0_i32_0 : i32, i32
  }
  func.func @transform_3(%arg0: i32) -> (i32, i32) {
    %c0_i32 = arith.constant 0 : i32
    %c0_i32_0 = arith.constant 0 : i32
    return %arg0, %c0_i32 : i32, i32
  }
}

</mosaic_0001>

<bundles_post_ra>
// kernel: tpu_custom_call.1
= control target key start
LH: loop header
LB: loop body
LE: loop exit
PB: predicated region body
PF: predicated region fallthrough
CT: control target
= control target key end

     0   :  { %v935_v1 = vmov 0.0   ;;  %vm57_vm0 = vcmask 130048   ;;  %vm936_vm1 = vmmov 0   ;;  %s1131_s0 = inlined_call_operand.vmem [shape: f32[2,2,16], index: 0, kind: input, shape index: {}]   ;;  %s1132_s1 = inlined_call_operand.vmem [shape: bf16[192,32], index: 1, kind: input, shape index: {}]   ;;  %s1133_s2 = inlined_call_operand.vmem [shape: f32[7,32], index: 2, kind: input, shape index: {}]   ;;  %s1134_s3 = inlined_call_operand.hbm [shape: f32[2,128], index: 3, kind: output, shape index: {}]  }
   0x1   :  { %v965_v0 = vld [vmem:[%s1132_s1] sm:$0xff]   ;;  %800 = vmatprep.subr.bf16.mxu0 %v935_v1  ;;  %806 = vmatprep.subr.bf16.mxu1 %v935_v1 }
   0x2   :  { %v45_v2 = vld [vmem:[%s1131_s0] sm:$0x3]  ;;  %801 = vmatpush3.bf16.msra.mxu0 %v965_v0  ;;  %802 = vmatprep.mubr.msk.bf16.mxu0 %vm936_vm1, %v935_v1 }
   0x3   :  { %v46_v3 = vpack.c.bf16 %v45_v2, %v45_v2  ;;  %810 = vmatprep.mubr.msk.bf16.mxu1 %vm936_vm1, %v935_v1  ;;  %814 = vmatprep.subr.bf16.mxu0 %v935_v1 }
   0x5   :  { %803 = vmatmul.mubr.msk.bf16.vlgmr.msra.gmra.mrb[0].mxu0 %vm57_vm0, %v46_v3 }
   0x6   :  { %818 = vmatprep.mubr.msk.bf16.mxu0 %vm936_vm1, %v935_v1 }
   0x7   :  { %8 = vsyncpa [#allocation3], 0  ;;  %v984_v4 = vld [vmem:[%s1132_s1 + $0x8] sm:$0xff]   ;;  %v991_v5 = vld [vmem:[%s1132_s1 + $0x10] sm:$0xff]   ;;  %vm120_vm2 = vcmask 261120   ;;  %vm309_vm3 = vcmask 1043456  }
   0x8   :  { %807 = vmatpush3.bf16.msra.mxu1 %v984_v4  ;;  %v998_v6 = vld [vmem:[%s1133_s2] ss:$0 sm:$0xff]  ;;  %v903_v15 = vld [vmem:[%s1132_s1 + $0x18] sm:$0xff]   ;;  %v1015_v17 = vld [vmem:[%s1132_s1 + $0x28] sm:$0xff]   ;;  %vm305_vm4 = vcmask 64512   ;;  %s937_s12 = smov 16  }
   0x9   :  { %808 = vmatprep.subr.bf16.mxu1 %v935_v1  ;;  %815 = vmatpush3.bf16.msra.mxu0 %v903_v15  ;;  %v904_v16 = vld [vmem:[%s1132_s1 + $0x20] sm:$0xff]   ;;  %v906_v27 = vld [vmem:[%s1132_s1 + $0x30] sm:$0xff]   ;;  %v299_v38 = vld [vmem:[%s1132_s1 + $0x38] sm:$0xf]  ;;  %s938_s13 = smov 32   ;;  %vm291_vm5 = vcmask 189568  }
   0xa   :  { %816 = vmatprep.subr.bf16.mxu0 %v935_v1  ;;  %v1022_v18 = vld [vmem:[%s1133_s2 + $0x1] ss:$0 sm:$0xff]  ;;  %v1035_v28 = vld [vmem:[%s1133_s2 + $0x2] ss:$0 sm:$0xff]  ;;  %v311_v39 = vsel %vm309_vm3, %v299_v38, 0  ;;  %vm297_vm6 = vcmask 517376  }
   0xb   :  { %v754_v36 = vld [vmem:[%s1131_s0 + $0x2] sm:$0x3]  ;;  %s939_s18 = smov 24   ;;  %s940_s19 = smov 64   ;;  %vm540_vm7 = vcmask 255168   ;;  %vm546_vm8 = vcmask 779776  }
   0xc   :  { %809 = vmatpush3.bf16.msra.mxu1 %v991_v5  ;;  %v355_v37 = vpack.c.bf16 %v754_v36, %v754_v36  ;;  %v1059_v40 = vld [vmem:[%s1133_s2 + $0x3] ss:$0 sm:$0xff]  ;;  %vm719_vm9 = vcmask 123904   ;;  %vm721_vm10 = vcmask 1042176  }
   0xd   :  { %822 = vmatprep.subr.bf16.mxu1 %v935_v1  ;;  %817 = vmatpush3.bf16.msra.mxu0 %v904_v16 }
   0xe   :  { %830 = vmatprep.subr.bf16.mxu0 %v935_v1 }
  0xd8   :  { %v95_v7 = vpop.f32.mrb[0].mxu0 }
  0xd9   :  { %v96_v8 = vadd.f32 %v998_v6, %v95_v7  ;;  %v804_v9 = vpop.f32.mrb[1].mxu0 }
  0xda   :  { %v98_v10 = vpop.f32.mrb[2].mxu0 }
  0xdb   :  { %v101_v11 = vmul.f32 0.01, %v96_v8  ;;  %v805_v12 = vpop.f32.mrb[3].mxu0 }
  0xdd   :  { %v102_v13 = vmax.f32 %v96_v8, %v101_v11  ;;  %v907_v11 = vld [vmem:[%s1132_s1 + $0x40] sm:$0xff]  }
  0xdf   :  { %v103_v14 = vpack.c.bf16 %v102_v13, %v102_v13 }
  0xe1   :  { %811 = vmatmul.mubr.msk.bf16.vlgmr.msra.gmra.mrb[0].mxu1 %vm120_vm2, %v103_v14 }
  0xe2   :  { %826 = vmatprep.mubr.msk.bf16.mxu1 %vm936_vm1, %v935_v1  ;;  %823 = vmatpush3.bf16.msra.mxu1 %v1015_v17 }
  0xe3   :  { %824 = vmatprep.subr.bf16.mxu1 %v935_v1 }
  0xe6   :  { %825 = vmatpush3.bf16.msra.mxu1 %v906_v27 }
  0xe7   :  { %836 = vmatprep.subr.bf16.mxu1 %v935_v1 }
 0x1b4   :  { %v158_v19 = vpop.f32.mrb[0].mxu1 }
 0x1b5   :  { %v159_v20 = vadd.f32 %v1022_v18, %v158_v19  ;;  %v812_v21 = vpop.f32.mrb[1].mxu1 }
 0x1b6   :  { %v161_v22 = vpop.f32.mrb[2].mxu1  ;;  %v752_v21 = vld [vmem:[%s1133_s2 + $0x4] ss:$0 sm:$0xff] }
 0x1b7   :  { %v164_v23 = vmul.f32 0.01, %v159_v20  ;;  %v813_v24 = vpop.f32.mrb[3].mxu1 }
 0x1b9   :  { %v165_v25 = vmax.f32 %v159_v20, %v164_v23 }
 0x1bb   :  { %v166_v26 = vpack.c.bf16 %v165_v25, %v165_v25 }
 0x1bd   :  { %819 = vmatmul.mubr.msk.bf16.vlgmr.msra.gmra.mrb[4].mxu0 %vm120_vm2, %v166_v26 }
 0x1be   :  { %832 = vmatprep.mubr.msk.bf16.mxu0 %vm936_vm1, %v935_v1  ;;  %831 = vmatpush3.bf16.msra.mxu0 %v311_v39  ;;  %v764_v39 = vld [vmem:[%s1133_s2 + $0x6] ss:$0 sm:$0xff] }
 0x1bf   :  { %842 = vmatprep.subr.bf16.mxu0 %v935_v1 }
 0x290   :  { %v220_v29 = vpop.f32.mrb[4].mxu0 }
 0x291   :  { %v221_v30 = vadd.f32 %v1035_v28, %v220_v29  ;;  %v820_v31 = vpop.f32.mrb[5].mxu0  ;;  %v910_v29 = vld [vmem:[%s1132_s1 + $0x58] sm:$0xff]  }
 0x292   :  { %v223_v32 = vpop.f32.mrb[6].mxu0 }
 0x293   :  { %v226_v33 = vmax.f32 %v221_v30, 0.0  ;;  %v821_v34 = vpop.f32.mrb[7].mxu0  ;;  %v760_v30 = vld [vmem:[%s1133_s2 + $0x5] ss:$0 sm:$0xff] }
 0x295   :  { %v227_v35 = vpack.c.bf16 %v226_v33, %v226_v33 }
 0x297   :  { %827 = vmatmul.mubr.msk.bf16.vlgmr.msra.gmra.mrb[4].mxu1 %vm120_vm2, %v227_v35 }
 0x298   :  { %837 = vmatpush3.bf16.msra.mxu1 %v965_v0  ;;  %838 = vmatprep.mubr.msk.bf16.mxu1 %vm936_vm1, %v935_v1 }
 0x299   :  { %850 = vmatprep.subr.bf16.mxu1 %v935_v1 }
 0x29f   :  { %839 = vmatmul.mubr.msk.bf16.vlgmr.msra.gmra.mrb[8].mxu1 %vm57_vm0, %v355_v37 }
 0x2a0   :  { %851 = vmatpush3.bf16.msra.mxu1 %v903_v15  ;;  %854 = vmatprep.mubr.msk.bf16.mxu1 %vm936_vm1, %v935_v1 }
 0x2a1   :  { %852 = vmatprep.subr.bf16.mxu1 %v935_v1 }
 0x2a4   :  { %853 = vmatpush3.bf16.msra.mxu1 %v904_v16 }
 0x2a5   :  { %872 = vmatprep.subr.bf16.mxu1 %v935_v1 }
 0x36a   :  { %v281_v41 = vpop.f32.mrb[4].mxu1 }
 0x36b   :  { %v282_v42 = vadd.f32 %v1059_v40, %v281_v41  ;;  %v828_v43 = vpop.f32.mrb[5].mxu1 }
 0x36c   :  { %v284_v44 = vpop.f32.mrb[6].mxu1 }
 0x36d   :  { %v300_v45 = vpack.c.bf16 %v282_v42, %v282_v42  ;;  %288 = vrot.lane.b32.xlu0 %v282_v42, %s937_s12  ;;  %v829_v46 = vpop.f32.mrb[7].mxu1 }
 0x36f   :  { %833 = vmatmul.mubr.msk.bf16.vlgmr.msra.gmra.mrb[8].mxu0 %vm305_vm4, %v300_v45 }
 0x370   :  { %843 = vmatpush3.bf16.msra.mxu0 %v984_v4  ;;  %846 = vmatprep.mubr.msk.bf16.mxu0 %vm936_vm1, %v935_v1 }
 0x371   :  { %294 = vrot.lane.b32.xlu0 %v226_v33, %s938_s13  ;;  %844 = vmatprep.subr.bf16.mxu0 %v935_v1 }
 0x372   :  { %v393_v47 = vpop.f32.mrb[8].mxu1 }
 0x373   :  { %v394_v48 = vadd.f32 %v998_v6, %v393_v47  ;;  %v840_v49 = vpop.f32.mrb[9].mxu1  ;;  %v548_v6 = vld [vmem:[%s1132_s1 + $0x3c] sm:$0xf] }
 0x374   :  { %v396_v50 = vpop.f32.mrb[10].mxu1  ;;  %845 = vmatpush3.bf16.msra.mxu0 %v991_v5  ;;  %v554_v10 = vsel %vm309_vm3, %v548_v6, 0 }
 0x375   :  { %v399_v51 = vmul.f32 0.01, %v394_v48  ;;  %v841_v52 = vpop.f32.mrb[11].mxu1  ;;  %858 = vmatprep.subr.bf16.mxu0 %v935_v1 }
 0x377   :  { %v400_v53 = vmax.f32 %v394_v48, %v399_v51 }
 0x379   :  { %v401_v54 = vpack.c.bf16 %v400_v53, %v400_v53 }
 0x37b   :  { %847 = vmatmul.mubr.msk.bf16.vlgmr.msra.gmra.mrb[12].mxu0 %vm120_vm2, %v401_v54 }
 0x37c   :  { %859 = vmatpush3.bf16.msra.mxu0 %v1015_v17  ;;  %862 = vmatprep.mubr.msk.bf16.mxu0 %vm936_vm1, %v935_v1 }
 0x37d   :  { %860 = vmatprep.subr.bf16.mxu0 %v935_v1 }
 0x380   :  { %861 = vmatpush3.bf16.msra.mxu0 %v906_v27 }
 0x381   :  { %866 = vmatprep.subr.bf16.mxu0 %v935_v1 }
 0x3df   :  { %v289_v55 = vpop.permute.xlu0 %288 }
 0x3e0   :  { %292 = vst.msk [vmem:[#allocation2] sm:$0x3] %vm291_vm5, %v289_v55 }
 0x3e3   :  { %v295_v56 = vpop.permute.xlu0 %294 }
 0x3e4   :  { %298 = vst.msk [vmem:[#allocation2] sm:$0x3] %vm297_vm6, %v295_v56 }
 0x44e   :  { %v439_v57 = vpop.f32.mrb[12].mxu0 }
 0x44f   :  { %v440_v58 = vadd.f32 %v1022_v18, %v439_v57  ;;  %v848_v59 = vpop.f32.mrb[13].mxu0  ;;  %v908_v18 = vld [vmem:[%s1132_s1 + $0x48] sm:$0xff]  }
 0x450   :  { %v442_v60 = vpop.f32.mrb[14].mxu0 }
 0x451   :  { %v445_v61 = vmul.f32 0.01, %v440_v58  ;;  %v849_v62 = vpop.f32.mrb[15].mxu0 }
 0x453   :  { %v446_v63 = vmax.f32 %v440_v58, %v445_v61 }
 0x455   :  { %v447_v0 = vpack.c.bf16 %v446_v63, %v446_v63 }
 0x457   :  { %855 = vmatmul.mubr.msk.bf16.vlgmr.msra.gmra.mrb[12].mxu1 %vm120_vm2, %v447_v0 }
 0x458   :  { %876 = vmatprep.mubr.msk.bf16.mxu1 %vm936_vm1, %v935_v1  ;;  %873 = vmatpush3.bf16.msra.mxu1 %v907_v11 }
 0x459   :  { %874 = vmatprep.subr.bf16.mxu1 %v935_v1 }
 0x45c   :  { %875 = vmatpush3.bf16.msra.mxu1 %v908_v18 }
 0x45d   :  { %880 = vmatprep.subr.bf16.mxu1 %v935_v1 }
 0x52a   :  { %v485_v2 = vpop.f32.mrb[12].mxu1 }
 0x52b   :  { %v486_v3 = vadd.f32 %v1035_v28, %v485_v2  ;;  %v856_v4 = vpop.f32.mrb[13].mxu1  ;;  %v909_v28 = vld [vmem:[%s1132_s1 + $0x50] sm:$0xff]   ;;  %s941_s1 = smov [#allocation2]  }
 0x52c   :  { %v488_v5 = vpop.f32.mrb[14].mxu1  ;;  %s729_s5 = sshll.u32 %s941_s1, 4  ;;  %s730_s5 = int_to_ptr.vmem [resolvable:$true] %s729_s5 }
 0x52d   :  { %v491_v7 = vmax.f32 %v486_v3, 0.0  ;;  %v857_v8 = vpop.f32.mrb[15].mxu1  ;;  %s911_s6 = scalar_lea.vmem %s730_s5, 32  ;;  %p916_p1 = scmp.lt.s32.totalorder %s730_s5, %s730_s5 }
 0x52e   :  { %p912_p0 = scmp.ne.s32.totalorder %s730_s5, %s911_s6  ;;  %p917_p2 = scmp.lt.s32.totalorder %s911_s6, %s911_s6 }
 0x52f   :  { %v492_v9 = vpack.c.bf16 %v491_v7, %v491_v7 }
 0x530   :  { %p918_p3 = por %p917_p2, %p916_p1 }
 0x531   :  { %863 = vmatmul.mubr.msk.bf16.vlgmr.msra.gmra.mrb[16].mxu0 %vm120_vm2, %v492_v9 }
 0x532   :  { %867 = vmatpush3.bf16.msra.mxu0 %v554_v10  ;;  %868 = vmatprep.mubr.msk.bf16.mxu0 %vm936_vm1, %v935_v1  ;;  %p919_p4 = pnand %p918_p3, %p912_p0 }
 0x604   :  { %v530_v12 = vpop.f32.mrb[16].mxu0 }
 0x605   :  { %v531_v13 = vadd.f32 %v1059_v40, %v530_v12  ;;  %v864_v14 = vpop.f32.mrb[17].mxu0 }
 0x606   :  { %v533_v15 = vpop.f32.mrb[18].mxu0 }
 0x607   :  { %v549_v16 = vpack.c.bf16 %v531_v13, %v531_v13  ;;  %537 = vrot.lane.b32.xlu1 %v531_v13, %s939_s18  ;;  %v865_v17 = vpop.f32.mrb[19].mxu0 }
 0x609   :  { %869 = vmatmul.mubr.msk.bf16.vlgmr.msra.gmra.mrb[8].mxu0 %vm305_vm4, %v549_v16 }
 0x60b   :  { %543 = vrot.lane.b32.xlu1 %v491_v7, %s940_s19 }
 0x679   :  { %v538_v19 = vpop.permute.xlu1 %537 }
 0x67a   :  { %541 = vst.msk [vmem:[#allocation2] sm:$0x3] %vm540_vm7, %v538_v19 }
 0x67d   :  { %v544_v20 = vpop.permute.xlu1 %543 }
 0x67e   :  { %547 = vst.msk [vmem:[#allocation2] sm:$0x3] %vm546_vm8, %v544_v20 }
 0x6dc   :  { %v590_v22 = vpop.f32.mrb[8].mxu0 }
 0x6dd   :  { %v888_v23 = vadd.f32 %v752_v21, %v590_v22  ;;  %v870_v24 = vpop.f32.mrb[9].mxu0 }
 0x6de   :  { %v593_v25 = vpop.f32.mrb[10].mxu0 }
 0x6df   :  { %v597_v26 = vpack.c.bf16 %v888_v23, %v888_v23  ;;  %v871_v27 = vpop.f32.mrb[11].mxu0 }
 0x6e1   :  { %877 = vmatmul.mubr.msk.bf16.vlgmr.msra.gmra.mrb[16].mxu1 %vm120_vm2, %v597_v26 }
 0x6e2   :  { %884 = vmatprep.mubr.msk.bf16.mxu1 %vm936_vm1, %v935_v1  ;;  %881 = vmatpush3.bf16.msra.mxu1 %v909_v28 }
 0x6e3   :  { %882 = vmatprep.subr.bf16.mxu1 %v935_v1 }
 0x6e6   :  { %883 = vmatpush3.bf16.msra.mxu1 %v910_v29 }
 0x7b4   :  { %v651_v31 = vpop.f32.mrb[16].mxu1 }
 0x7b5   :  { %v652_v32 = vadd.f32 %v760_v30, %v651_v31  ;;  %v878_v33 = vpop.f32.mrb[17].mxu1 }
 0x7b6   :  { %v654_v34 = vpop.f32.mrb[18].mxu1 }
 0x7b7   :  { %v657_v35 = vmul.f32 0.01, %v652_v32  ;;  %v879_v36 = vpop.f32.mrb[19].mxu1 }
 0x7b9   :  { %v658_v37 = vmax.f32 %v652_v32, %v657_v35 }
 0x7bb   :  { %v659_v38 = vpack.c.bf16 %v658_v37, %v658_v37 }
 0x7bd   :  { %885 = vmatmul.mubr.msk.bf16.vlgmr.msra.gmra.mrb[20].mxu1 %vm120_vm2, %v659_v38 }
 0x890   :  { %v713_v40 = vpop.f32.mrb[20].mxu1 }
 0x891   :  { %v714_v41 = vadd.f32 %v764_v39, %v713_v40  ;;  %v886_v42 = vpop.f32.mrb[21].mxu1 }
 0x892   :  { %v716_v43 = vpop.f32.mrb[22].mxu1 }
 0x893   :  { %v887_v44 = vpop.f32.mrb[23].mxu1  ;;  %720 = vst.msk [vmem:[#allocation2] sm:$0x3] %vm719_vm9, %v714_v41 }
 0x894   :  { %722 = vst.msk [vmem:[#allocation2] sm:$0x3] %vm721_vm10, %v935_v1 }
 0x895   :  { %922 = shalt.err (!%p919_p4)
}
 0x896   :  { %s923_s8 = scalar_lea.hbm %s1134_s3, 32 }
 0x897   :  { %p924_p5 = scmp.ne.s32.totalorder %s1134_s3, %s923_s8  ;;  %p927_p6 = scmp.lt.u32.totalorder %s923_s8, %s1134_s3 }
 0x899   :  { %p929_p7 = pnand %p927_p6, %p924_p5 }
 0x89b   :  { %932 = shalt.err (!%p929_p7)
}
 0x89c   :  { %732 = dma.vmem_to_hbm [thread:$0]  %s730_s5, 32, %s1134_s3, [#allocation3]  }
 0x89d   :  { %933 = dma.done.wait [#allocation3], 32  }
 0x89e   :  { %934 = vsyncadd [#allocation3], 4294967264 }
 0x89f   :  { %736 = vsyncpa [#allocation3], 1 }

</bundles_post_ra>
